<compile_context>
chip_gen: v5e
topology: v5e:2x2
jax: 0.10.0
libtpu: 0.0.40
codegen_flags: <defaults>
</compile_context>

<pallas_src>
import jax
import jax.numpy as jnp
from jax.experimental import pallas as pl
from jax.experimental.pallas import tpu as pltpu


def _cdiv(a, b):
    return -(-a // b)


def _round_up(a, m):
    return _cdiv(a, m) * m


def _tpu_hw_info():
    """Best-effort (per-core VMEM bytes, TensorCores per chip) for the local device."""
    vmem_bytes = None
    num_cores = 1
    try:
        kind = jax.devices()[0].device_kind.lower()
    except Exception:
        kind = ""
    if ("v7" in kind) or ("7x" in kind):
        num_cores = 2                     # v7x: 2 TCs, 64 MiB VMEM per TC
        vmem_bytes = 64 << 20
    elif kind:
        vmem_bytes = 128 << 20            # v4 / v5e / v5p / v6e: 128 MiB per core
    try:                                  # refine VMEM size if the query works here
        info = pltpu.get_tpu_info()
        v = int(getattr(info, "vmem_capacity_bytes", 0) or 0)
        if v >= (16 << 20):
            vmem_bytes = v
    except Exception:
        pass
    if vmem_bytes is None:
        vmem_bytes = 64 << 20             # conservative default
    return vmem_bytes, num_cores


def _make_loss_kernel(per_param, reduction, k, n_valid_rows):
    inv_k = 1.0 / float(k)

    def kernel(xg_ref, y_ref, out_ref, acc_ref):
        c = pl.program_id(0)
        i = pl.program_id(1)
        n_inner = pl.num_programs(1)
        tile_rows = xg_ref.shape[0]
        groups = tile_rows // 8

        @pl.when(i == 0)
        def _init():
            acc_ref[...] = jnp.zeros_like(acc_ref)

        xg = xg_ref[...].astype(jnp.float32)
        y = y_ref[...].astype(jnp.float32)
        d = xg - y
        sq = d * d

        # Mask rows past the true row count (ragged tail of the last tile and
        # clamped duplicate blocks) -- avoids any host-side padding copy.
        row0 = (c * n_inner + i) * tile_rows
        row_ids = row0 + jax.lax.broadcasted_iota(jnp.int32, (tile_rows, 1), 0)
        sq = jnp.where(row_ids < n_valid_rows, sq, 0.0)

        if per_param:
            per_row = jnp.sum(sq, axis=-1, keepdims=True)          # (tile_rows, 1)
            if reduction == "mean":
                per_row = per_row * jnp.float32(inv_k)
            r = jnp.sqrt(per_row)                                   # (tile_rows, 1)
            partial = jnp.sum(r.reshape(groups, 8, 1), axis=0)      # (8, 1)
        else:
            # Fold across sublane groups only (plain VPU adds); defer the
            # cross-lane/cross-sublane reduce to the finalize step so there is
            # no per-step scalar dependency chain.
            partial = jnp.sum(sq.reshape(groups, 8, -1), axis=0)    # (8, k)

        acc_ref[...] += partial

        @pl.when(i == n_inner - 1)
        def _finalize():
            total = jnp.sum(acc_ref[...])
            out_ref[...] = jnp.zeros_like(out_ref) + total          # lane-dense store

    return kernel


def measurement_mse_loss(x, y, kept_inds, per_param=False, reduction="mean",
                         target_tile_bytes=None, core_splits=None):
    """Pallas equivalent of Measurement_MSE_Loss(kept_inds, per_param, reduction)(x, y).

    x: (B, C, L); y: (B, C, K) with K == len(kept_inds). Returns a f32 scalar.
    """
    assert reduction in ("mean", "sum")
    B, C, L = x.shape
    K = int(kept_inds.shape[0])
    assert y.shape == (B, C, K)
    N = B * C

    # Pre-gather in the wrapper (exact): removes the in-kernel one-hot MXU
    # matmul (the previous binding unit) and the O(L*K) one-hot matrix.  The
    # kernel is now a pure, HBM-roofline (xg - y)^2 reduction over (N, K).
    xg2 = jnp.take(x, kept_inds.astype(jnp.int32), axis=2).reshape(N, K)
    y2 = y.reshape(N, K)

    # ---- generation-aware split / VMEM / tile sizing ------------------------
    vmem_bytes, hw_cores = _tpu_hw_info()
    if core_splits is None:
        core_splits = hw_cores
    # Scoped-VMEM budget: ~45% of physical per-core VMEM, clamped to [16, 64] MiB.
    vmem_limit = int(min(max(vmem_bytes * 45 // 100, 16 << 20), 64 << 20))
    if target_tile_bytes is None:
        # Keep double-buffered inputs + elementwise intermediates well under the
        # scoped limit (bigger tiles on 128 MiB chips, smaller on v7x's 64 MiB).
        target_tile_bytes = int(min(max(vmem_limit // 12, 512 << 10), 8 << 20))

    lane_k = _round_up(max(K, 1), 128)
    bytes_per_row = lane_k * 4                          # lane-padded f32 row / input
    tile_rows = max(8, (int(target_tile_bytes) // bytes_per_row) // 8 * 8)
    tile_rows = int(min(tile_rows, _round_up(N, 8)))

    n_tiles = _cdiv(N, tile_rows)
    # Never more splits than there are row tiles -> no systematic duplicate-tile
    # DMAs on single-TC chips or tiny inputs.
    num_splits = int(max(1, min(int(core_splits), n_tiles)))
    n_inner = _cdiv(n_tiles, num_splits)
    max_block = n_tiles - 1

    def row_block_index(c, i):
        # Clamp so every DMA stays inside the array; over-reach is masked in-kernel.
        return (jnp.minimum(c * n_inner + i, max_block), 0)

    kernel = _make_loss_kernel(per_param, reduction, K, N)
    acc_cols = 1 if per_param else K

    partials = pl.pallas_call(
        kernel,
        out_shape=jax.ShapeDtypeStruct((num_splits * 8, 128), jnp.float32),
        grid=(num_splits, n_inner),
        in_specs=[
            pl.BlockSpec((tile_rows, K), row_block_index),
            pl.BlockSpec((tile_rows, K), row_block_index),
        ],
        out_specs=pl.BlockSpec((8, 128), lambda c, i: (c, 0)),
        scratch_shapes=[pltpu.VMEM((8, acc_cols), jnp.float32)],
        compiler_params=pltpu.CompilerParams(
            dimension_semantics=("parallel", "arbitrary"),
            vmem_limit_bytes=vmem_limit,
        ),
    )(xg2, y2)

    # Each split's partial is replicated across its (8, 128) output block.
    total = jnp.sum(partials[::8, 0])

    if reduction == "mean":
        denom = jnp.float32(N if per_param else N * K)
        return total / denom
    return total


def _reference(x, y, kept_inds, per_param, reduction):
    xg = jnp.take(x, kept_inds, axis=2).astype(jnp.float32)
    yf = y.astype(jnp.float32)
    sq = jnp.square(xg - yf)
    if not per_param:
        return jnp.mean(sq) if reduction == "mean" else jnp.sum(sq)
    per_chan = jnp.mean(sq, axis=2) if reduction == "mean" else jnp.sum(sq, axis=2)
    r = jnp.sqrt(per_chan)
    return jnp.mean(r) if reduction == "mean" else jnp.sum(r)


if __name__ == "__main__":
    key = jax.random.PRNGKey(0)

    # (B, C, L, K, target_tile_bytes, core_splits)
    configs = [
        (2, 4, 16, 8, None, None),  # nominal small shapes, auto sizing
        (5, 8, 40, 7, 1, 2),        # odd sizes + tiny tile target + forced 2 splits
                                    # -> multi-step grid, ragged tail, clamped
                                    #    duplicate block exercised on any chip
    ]

    ok = True
    for (B, C, L, K, tgt, splits) in configs:
        key, k1, k2, k3 = jax.random.split(key, 4)
        kept_inds = jax.random.permutation(k3, L)[:K].astype(jnp.int32)
        x = jax.random.normal(k1, (B, C, L), dtype=jnp.float32)
        y = jax.random.normal(k2, (B, C, K), dtype=jnp.float32)

        for per_param in (False, True):
            for reduction in ("mean", "sum"):
                got = jax.block_until_ready(
                    measurement_mse_loss(x, y, kept_inds, per_param=per_param,
                                         reduction=reduction,
                                         target_tile_bytes=tgt,
                                         core_splits=splits))
                want = _reference(x, y, kept_inds, per_param, reduction)
                if not jnp.allclose(got, want, rtol=1e-5, atol=1e-5):
                    ok = False
                    print(f"MISMATCH B={B} C={C} L={L} K={K} "
                          f"per_param={per_param} reduction={reduction}: "
                          f"{got} vs {want}")

    if ok:
        print("KERNEL_OK")
</pallas_src>

<mosaic_0001>
module attributes {stable_mosaic.version = 11 : i64} {
  func.func @kernel(%arg0: i32, %arg1: i32, %arg2: memref<8x8xf32, #tpu.memory_space<vmem>>, %arg3: memref<8x8xf32, #tpu.memory_space<vmem>>, %arg4: memref<8x128xf32, #tpu.memory_space<vmem>>, %arg5: memref<8x8xf32, #tpu.memory_space<vmem>>) attributes {dimension_semantics = [#tpu.dimension_semantics<parallel>, #tpu.dimension_semantics<arbitrary>], iteration_bounds = array<i64: 1, 1>, scalar_prefetch = 0 : i64, scratch_operands = 1 : i64, tpu.core_type = #tpu.core_type<tc>, window_params = [{transform_indices = @transform_0, window_bounds = array<i64: 8, 8>}, {transform_indices = @transform_1, window_bounds = array<i64: 8, 8>}, {transform_indices = @transform_2, window_bounds = array<i64: 8, 128>}]} {
    %c0_i32 = arith.constant 0 : i32
    %0 = arith.cmpi eq, %arg1, %c0_i32 : i32
    %1 = arith.extui %0 : i1 to i32
    %c0_i32_0 = arith.constant 0 : i32
    %2 = arith.cmpi ne, %1, %c0_i32_0 : i32
    scf.if %2 {
      %cst_12 = arith.constant 0.000000e+00 : f32
      %27 = vector.broadcast %cst_12 : f32 to vector<8x8xf32>
      %c0_13 = arith.constant 0 : index
      %c0_14 = arith.constant 0 : index
      %28 = vector.load %arg5[%c0_13, %c0_14] : memref<8x8xf32, #tpu.memory_space<vmem>>, vector<8x8xf32>
      tpu.vector_store %arg5[%c0_13, %c0_14], %27 {strides = array<i32>} : memref<8x8xf32, #tpu.memory_space<vmem>>, vector<8x8xf32>,
    } else {
    }
    %c0 = arith.constant 0 : index
    %c0_1 = arith.constant 0 : index
    %3 = vector.load %arg2[%c0, %c0_1] : memref<8x8xf32, #tpu.memory_space<vmem>>, vector<8x8xf32>
    %c0_2 = arith.constant 0 : index
    %c0_3 = arith.constant 0 : index
    %4 = vector.load %arg3[%c0_2, %c0_3] : memref<8x8xf32, #tpu.memory_space<vmem>>, vector<8x8xf32>
    %5 = arith.subf %3, %4 : vector<8x8xf32>
    %6 = arith.mulf %5, %5 : vector<8x8xf32>
    %c1_i32 = arith.constant 1 : i32
    %7 = arith.muli %arg0, %c1_i32 : i32
    %8 = arith.addi %7, %arg1 : i32
    %c8_i32 = arith.constant 8 : i32
    %9 = arith.muli %8, %c8_i32 : i32
    %10 = tpu.iota {dimensions = array<i32: 0>} : vector<8x1xi32>
    %11 = vector.broadcast %9 : i32 to vector<8x1xi32>
    %12 = arith.addi %11, %10 : vector<8x1xi32>
    %c8_i32_4 = arith.constant 8 : i32
    %13 = vector.broadcast %c8_i32_4 : i32 to vector<8x1xi32>
    %14 = arith.cmpi slt, %12, %13 : vector<8x1xi32>
    %cst = arith.constant 0.000000e+00 : f32
    %15 = vector.shape_cast %14 : vector<8x1xi1> to vector<8x1xi1>
    %16 = vector.broadcast %15 : vector<8x1xi1> to vector<8x8xi1>
    %17 = vector.broadcast %cst : f32 to vector<8x8xf32>
    %18 = arith.select %16, %6, %17 : vector<8x8xi1>, vector<8x8xf32>
    %19 = vector.shape_cast %18 : vector<8x8xf32> to vector<1x8x8xf32>
    %cst_5 = arith.constant dense<0.000000e+00> : vector<8x8xf32>
    %20 = vector.multi_reduction <add>, %19, %cst_5 [0] : vector<1x8x8xf32> to vector<8x8xf32>
    %c0_6 = arith.constant 0 : index
    %c0_7 = arith.constant 0 : index
    %21 = vector.load %arg5[%c0_6, %c0_7] : memref<8x8xf32, #tpu.memory_space<vmem>>, vector<8x8xf32>
    %22 = arith.addf %21, %20 : vector<8x8xf32>
    %c0_8 = arith.constant 0 : index
    %c0_9 = arith.constant 0 : index
    %23 = vector.load %arg5[%c0_8, %c0_9] : memref<8x8xf32, #tpu.memory_space<vmem>>, vector<8x8xf32>
    tpu.vector_store %arg5[%c0_8, %c0_9], %22 {strides = array<i32>} : memref<8x8xf32, #tpu.memory_space<vmem>>, vector<8x8xf32>,
    %c0_i32_10 = arith.constant 0 : i32
    %24 = arith.cmpi eq, %arg1, %c0_i32_10 : i32
    %25 = arith.extui %24 : i1 to i32
    %c0_i32_11 = arith.constant 0 : i32
    %26 = arith.cmpi ne, %25, %c0_i32_11 : i32
    scf.if %26 {
      %c0_12 = arith.constant 0 : index
      %c0_13 = arith.constant 0 : index
      %27 = vector.load %arg5[%c0_12, %c0_13] : memref<8x8xf32, #tpu.memory_space<vmem>>, vector<8x8xf32>
      %28 = vector.shape_cast %27 : vector<8x8xf32> to vector<1x8x8xf32>
      %cst_14 = arith.constant dense<0.000000e+00> : vector<1xf32>
      %29 = vector.multi_reduction <add>, %28, %cst_14 [1, 2] : vector<1x8x8xf32> to vector<1xf32>
      %30 = vector.shape_cast %29 : vector<1xf32> to vector<1x1x1xf32>
      %31 = vector.extract %30[0, 0, 0] : f32 from vector<1x1x1xf32>
      %cst_15 = arith.constant 0.000000e+00 : f32
      %32 = vector.broadcast %cst_15 : f32 to vector<8x128xf32>
      %33 = vector.broadcast %31 : f32 to vector<8x128xf32>
      %34 = arith.addf %32, %33 : vector<8x128xf32>
      %c0_16 = arith.constant 0 : index
      %c0_17 = arith.constant 0 : index
      %35 = vector.load %arg4[%c0_16, %c0_17] : memref<8x128xf32, #tpu.memory_space<vmem>>, vector<8x128xf32>
      tpu.vector_store %arg4[%c0_16, %c0_17], %34 {strides = array<i32>} : memref<8x128xf32, #tpu.memory_space<vmem>>, vector<8x128xf32>,
    } else {
    }
    return
  }
  func.func @transform_0(%arg0: i32, %arg1: i32) -> (i32, i32) {
    %c1_i32 = arith.constant 1 : i32
    %0 = arith.muli %arg0, %c1_i32 : i32
    %1 = arith.addi %0, %arg1 : i32
    %c0_i32 = arith.constant 0 : i32
    %2 = arith.minsi %1, %c0_i32 : i32
    %c0_i32_0 = arith.constant 0 : i32
    %c0_i32_1 = arith.constant 0 : i32
    return %2, %c0_i32_0 : i32, i32
  }
  func.func @transform_1(%arg0: i32, %arg1: i32) -> (i32, i32) {
    %c1_i32 = arith.constant 1 : i32
    %0 = arith.muli %arg0, %c1_i32 : i32
    %1 = arith.addi %0, %arg1 : i32
    %c0_i32 = arith.constant 0 : i32
    %2 = arith.minsi %1, %c0_i32 : i32
    %c0_i32_0 = arith.constant 0 : i32
    %c0_i32_1 = arith.constant 0 : i32
    return %2, %c0_i32_0 : i32, i32
  }
  func.func @transform_2(%arg0: i32, %arg1: i32) -> (i32, i32) {
    %c0_i32 = arith.constant 0 : i32
    %c0_i32_0 = arith.constant 0 : i32
    return %arg0, %c0_i32 : i32, i32
  }
}

</mosaic_0001>

<bundles_post_ra>
// kernel: tpu_custom_call.1
= control target key start
LH: loop header
LB: loop body
LE: loop exit
PB: predicated region body
PF: predicated region fallthrough
CT: control target
= control target key end

     0   :  { %7 = vsyncpa [#allocation4], 0  ;;  %s232_s0 = inlined_call_operand.hbm [shape: f32[8,8], index: 0, kind: input, shape index: {}]   ;;  %s233_s1 = inlined_call_operand.hbm [shape: f32[8,8], index: 1, kind: input, shape index: {}]   ;;  %s234_s2 = inlined_call_operand.hbm [shape: f32[8,128], index: 2, kind: output, shape index: {}]  }
   0x1   :  { %8 = vsyncpa [#allocation7], 0 }
   0x2   :  { %9 = vsyncpa [#allocation5], 0  ;;  %s20_s11 = sshll.u32 %s232_s0, 4  ;;  %s204_s12 = smov [#allocation3]   ;;  %s21_s11 = int_to_ptr.hbm [resolvable:$true] %s20_s11 }
   0x3   :  { %s22_s13 = sshll.u32 %s204_s12, 4  ;;  %s36_s16 = sshll.u32 %s233_s1, 4  ;;  %s23_s13 = int_to_ptr.vmem [resolvable:$true] %s22_s13  ;;  %s37_s16 = int_to_ptr.hbm [resolvable:$true] %s36_s16 }
   0x4   :  { %25 = dma.hbm_to_vmem [thread:$0]  %s21_s11, 128, %s23_s13, [#allocation4]  }
   0x5   :  { %s205_s17 = smov [#allocation6]  }
   0x6   :  { %s38_s18 = sshll.u32 %s205_s17, 4  ;;  %s39_s18 = int_to_ptr.vmem [resolvable:$true] %s38_s18 }
   0x7   :  { %41 = dma.hbm_to_vmem [thread:$0]  %s37_s16, 128, %s39_s18, [#allocation7]  }
   0x8   :  { %198 = dma.done.wait [#allocation4], 128  }
   0x9   :  { %199 = vsyncadd [#allocation4], 4294967168 }
   0xa   :  { %200 = dma.done.wait [#allocation7], 128  }
   0xb   :  { %201 = vsyncadd [#allocation7], 4294967168  ;;  %vm60_vm0 = vcmask 64512   ;;  %v206_v0 = vmov 0.0   ;;  %v62_v1 = vld [vmem:[#allocation3] sm:$0xff]  ;;  %v63_v2 = vld [vmem:[#allocation6] sm:$0xff] }
   0xc   :  { %61 = vst.msk [vmem:[#allocation2] sm:$0xff] %vm60_vm0, %v206_v0  ;;  %v64_v3 = vsub.f32 %v62_v1, %v63_v2  ;;  %s207_s0 = smov [#allocation8]   ;;  %s105_s21 = sshll.u32 %s234_s2, 4  ;;  %s106_s21 = int_to_ptr.hbm [resolvable:$true] %s105_s21 }
   0xd   :  { %s103_s1 = sshll.u32 %s207_s0, 4  ;;  %s104_s1 = int_to_ptr.vmem [resolvable:$true] %s103_s1 }
   0xe   :  { %v65_v5 = vmul.f32 %v64_v3, %v64_v3 }
  0x13   :  { %v77_v4 = vld [vmem:[#allocation2] sm:$0xff] }
  0x14   :  { %v78_v6 = vadd.f32 %v77_v4, %v65_v5 }
  0x16   :  { %80 = vst.msk [vmem:[#allocation2] sm:$0xff] %vm60_vm0, %v78_v6 }
  0x1d   :  { %v84_v7 = vld [vmem:[#allocation2] sm:$0xff] }
  0x1e   :  { %v85_v8 = vsel %vm60_vm0, %v84_v7, 0.0 }
  0x1f   :  { %86 = vadd.xlane.f32.xlu0 %v85_v8 }
  0x92   :  { %v87_v9 = vpop.xlane.xlu0 %86 }
  0x93   :  { %v88_v10 = vrot.slane %v87_v9, 4 }
  0x95   :  { %v89_v11 = vadd.f32 %v88_v10, %v87_v9 }
  0x97   :  { %v90_v12 = vrot.slane %v89_v11, 2 }
  0x99   :  { %v91_v13 = vadd.f32 %v90_v12, %v89_v11 }
  0x9b   :  { %v92_v14 = vrot.slane %v91_v13, 1 }
  0x9d   :  { %v93_v15 = vadd.f32 %v92_v14, %v91_v13 }
  0x9f   :  { %120 = vpush %v93_v15 }
  0xd0   :  { %s121_s22 = spop %120 }
  0xd1   :  { %v95_v16 = vstv %s121_s22 }
  0xd2   :  { %97 = vst [vmem:[#allocation8] sm:$0xff] %v95_v16 }
  0xd3   :  { %108 = dma.vmem_to_hbm [thread:$0]  %s104_s1, 128, %s106_s21, [#allocation5]  }
  0xd4   :  { %202 = dma.done.wait [#allocation5], 128  }
  0xd5   :  { %203 = vsyncadd [#allocation5], 4294967168 }
  0xd6   :  { %113 = vsyncpa [#allocation4], 1 }
  0xd7   :  { %114 = vsyncpa [#allocation7], 1 }
  0xd8   :  { %115 = vsyncpa [#allocation5], 1 }

</bundles_post_ra>
